<compile_context>
chip_gen: v7x
topology: tpu7x:2x2x1
jax: 0.10.0
libtpu: 0.0.40
codegen_flags: <defaults>
</compile_context>

<pallas_src>
import math
from functools import lru_cache

import jax
import jax.numpy as jnp
from jax import lax
from jax.experimental import pallas as pl
from jax.experimental.pallas import tpu as pltpu

D_IN = 3        # input feature dim (nn.Linear(3, 100))
H = 100         # hidden dim
D_OUT = 1       # single-output head

H_PAD = 104     # hidden dim padded to a multiple of the f32 sublane tile (8)
LANE = 128      # lane width
TILE_N = 2048   # batch (lane) tile per grid step (amortizes grid-step overhead)
CHUNK = 256     # lanes processed per inner-loop iteration (hT <= 26 vregs)


def _round_up(x, m):
    return ((x + m - 1) // m) * m


def _make_kernel(tile_n, chunk):
    num_chunks = tile_n // chunk

    def kernel(xT_ref, w1_ref, b1_ref, w2_ref, b2_ref, o_ref):
        # ---- hoisted parameter loads: once per grid step, reused by every chunk.
        # The (H_PAD, 1) operands keep lane-replicated layouts, so the FMAs
        # below broadcast on the VPU operand path instead of re-materializing
        # full (H_PAD, chunk) broadcast arrays per chunk.
        w1 = w1_ref[...]            # (H_PAD, 3)  W1 rows, zero-padded [H:H_PAD)
        w1c0 = w1[:, 0:1]
        w1c1 = w1[:, 1:2]
        w1c2 = w1[:, 2:3]
        b1 = b1_ref[...]            # (H_PAD, 1)
        w2 = w2_ref[...]            # (H_PAD, 1)  zero-padded rows null padded hidden units
        b2 = b2_ref[...]            # (1, 1)

        def chunk_at(off):
            # xc: (3, chunk) with the batch on lanes -> lane-dense loads/stores.
            xc = xT_ref[:, pl.ds(off, chunk)]
            # Layer 1 on the VPU: K = 3, so three broadcast FMAs beat an MXU
            # matmul whose contraction dim would be ~98% zero padding.
            hT = b1 + w1c0 * xc[0:1, :]
            hT = hT + w1c1 * xc[1:2, :]
            hT = hT + w1c2 * xc[2:3, :]
            hT = jnp.maximum(hT, 0.0)            # (H_PAD, chunk) <= 26 live vregs
            # Layer 2 (single output): VPU multiply + sublane (XLU) reduction.
            y = jnp.sum(hT * w2, axis=0, keepdims=True) + b2
            o_ref[:, pl.ds(off, chunk)] = y.astype(o_ref.dtype)

        if num_chunks == 1:
            chunk_at(0)
        else:
            # fori_loop (not a Python for) bounds hT's live range to one chunk;
            # a modest unroll keeps LLO scheduling visibility without letting
            # multiple chunks' hT overlap in the vreg file.
            def body(c, carry):
                chunk_at(pl.multiple_of(c * chunk, chunk))
                return carry

            lax.fori_loop(0, num_chunks, body, 0, unroll=2)

    return kernel


@lru_cache(maxsize=None)
def _build_mlp_call(n_pad, tile_n, chunk):
    grid_n = n_pad // tile_n
    kernel = _make_kernel(tile_n, chunk)
    cost = pl.CostEstimate(
        flops=2 * n_pad * (D_IN * H + H),
        transcendentals=0,
        bytes_accessed=(D_IN + 1) * n_pad * 4 + (H_PAD * (D_IN + 2) + 1) * 4,
    )
    return pl.pallas_call(
        kernel,
        out_shape=jax.ShapeDtypeStruct((1, n_pad), jnp.float32),
        grid=(grid_n,),
        in_specs=[
            pl.BlockSpec((D_IN, tile_n), lambda i: (0, i)),   # x tile per step
            pl.BlockSpec((H_PAD, D_IN), lambda i: (0, 0)),    # weights resident in VMEM
            pl.BlockSpec((H_PAD, 1), lambda i: (0, 0)),
            pl.BlockSpec((H_PAD, 1), lambda i: (0, 0)),
            pl.BlockSpec((1, 1), lambda i: (0, 0)),
        ],
        out_specs=pl.BlockSpec((1, tile_n), lambda i: (0, i)),  # lane-dense output
        compiler_params=pltpu.CompilerParams(
            dimension_semantics=("parallel",)),                 # megacore-shardable batch axis
        cost_estimate=cost,
    )


def pad_params(params):
    """Pad/transpose parameters ONCE (hoisted out of the per-call hot path)."""
    w1_t, b1, w2_t, b2 = params            # (3,100), (100,), (100,1), (1,)
    w1_p = jnp.zeros((H_PAD, D_IN), jnp.float32).at[:H, :].set(w1_t.T)  # (104, 3)
    b1_p = jnp.zeros((H_PAD, 1), jnp.float32).at[:H, 0].set(b1)         # (104, 1)
    w2_p = jnp.zeros((H_PAD, 1), jnp.float32).at[:H, :].set(w2_t)       # (104, 1)
    b2_p = jnp.asarray(b2, jnp.float32).reshape(1, 1)                   # (1, 1)
    return w1_p, b1_p, w2_p, b2_p


def _mlp_pallas(x_flat, padded_params):
    """x_flat: (N, 3) -> (N,) float32 reward logits (lane-dense)."""
    w1_p, b1_p, w2_p, b2_p = padded_params
    n = x_flat.shape[0]

    # Bucketed padded batch size: multiple of 128 below TILE_N, multiple of
    # TILE_N above it -> only a handful of distinct compiles across batch sizes.
    n_pad = _round_up(max(n, 1), LANE)
    if n_pad >= TILE_N:
        n_pad = _round_up(n_pad, TILE_N)
        tile_n = TILE_N
    else:
        tile_n = n_pad
    chunk = CHUNK if tile_n % CHUNK == 0 else LANE

    # Single pad-of-transpose: (N, 3) -> (3, n_pad) with the batch on lanes.
    # Only ~12 B/row of real data moves; padded lanes are sliced off below.
    xT = jnp.pad(x_flat.astype(jnp.float32).T, ((0, 0), (0, n_pad - n)))

    out = _build_mlp_call(n_pad, tile_n, chunk)(xT, w1_p, b1_p, w2_p, b2_p)
    return out[0, :n]                       # (n,) — caller reshapes only if required


def simple_reward_model_forward(x, padded_params):
    """Mirrors SimpleRewardModel.forward semantics.

    x: (B, 2, 3) -> returns (B, 2)   (training mode)
    x: (B, 3)    -> returns (B, 1)   (eval mode)
    """
    if x.ndim == 3:
        b_sz, two, dim = x.shape
        flat_logits = _mlp_pallas(x.reshape(-1, dim), padded_params)
        return flat_logits.reshape(b_sz, two)
    else:
        return _mlp_pallas(x, padded_params).reshape(-1, D_OUT)


def init_params(key):
    """Deterministic init mimicking PyTorch nn.Linear defaults U(-1/sqrt(fan_in), +)."""
    k1, k2, k3, k4 = jax.random.split(key, 4)
    bound1 = 1.0 / math.sqrt(D_IN)
    bound2 = 1.0 / math.sqrt(H)
    # stored transposed: (in, out)
    w1_t = jax.random.uniform(k1, (D_IN, H), jnp.float32, -bound1, bound1)
    b1 = jax.random.uniform(k2, (H,), jnp.float32, -bound1, bound1)
    w2_t = jax.random.uniform(k3, (H, D_OUT), jnp.float32, -bound2, bound2)
    b2 = jax.random.uniform(k4, (D_OUT,), jnp.float32, -bound2, bound2)
    return w1_t, b1, w2_t, b2


def _reference_forward(x, params):
    """Plain-JAX reference (full f32 precision) for correctness checking."""
    w1_t, b1, w2_t, b2 = params
    orig_3d = x.ndim == 3
    if orig_3d:
        b_sz = x.shape[0]
        x = x.reshape(-1, x.shape[-1])
    hp = jax.lax.Precision.HIGHEST
    h = jnp.maximum(jnp.dot(x, w1_t, precision=hp) + b1, 0.0)
    y = jnp.dot(h, w2_t, precision=hp) + b2
    return y.reshape(b_sz, 2) if orig_3d else y


if __name__ == "__main__":
    key = jax.random.PRNGKey(0)
    k_params, k_train, k_eval = jax.random.split(key, 3)
    params = init_params(k_params)
    padded_params = pad_params(params)          # padding hoisted out of hot path

    # Training-mode input: (batch_size, 2, dim=3)
    x_train = jax.random.normal(k_train, (4, 2, D_IN), jnp.float32)
    logits_train = jax.block_until_ready(
        simple_reward_model_forward(x_train, padded_params))
    assert logits_train.shape == (4, 2)

    # Eval-mode input: (batch_size, dim=3)
    x_eval = jax.random.normal(k_eval, (4, D_IN), jnp.float32)
    logits_eval = jax.block_until_ready(
        simple_reward_model_forward(x_eval, padded_params))
    assert logits_eval.shape == (4, 1)

    # Verify against a pure-JAX reference of the same MLP.
    ref_train = _reference_forward(x_train, params)
    ref_eval = _reference_forward(x_eval, params)
    assert jnp.allclose(logits_train, ref_train, atol=1e-5, rtol=1e-5)
    assert jnp.allclose(logits_eval, ref_eval, atol=1e-5, rtol=1e-5)

    # Larger batch to exercise the multi-tile grid + in-kernel chunk loop.
    x_big = jax.random.normal(jax.random.PRNGKey(1), (3000, D_IN), jnp.float32)
    y_big = jax.block_until_ready(simple_reward_model_forward(x_big, padded_params))
    assert y_big.shape == (3000, 1)
    ref_big = _reference_forward(x_big, params)
    assert jnp.allclose(y_big, ref_big, atol=1e-5, rtol=1e-5)

    print("KERNEL_OK")
</pallas_src>

<mosaic_0001>
module attributes {stable_mosaic.version = 11 : i64} {
  func.func @kernel(%arg0: i32, %arg1: memref<3x128xf32, #tpu.memory_space<vmem>>, %arg2: memref<104x3xf32, #tpu.memory_space<vmem>>, %arg3: memref<104x1xf32, #tpu.memory_space<vmem>>, %arg4: memref<104x1xf32, #tpu.memory_space<vmem>>, %arg5: memref<1x1xf32, #tpu.memory_space<vmem>>, %arg6: memref<1x128xf32, #tpu.memory_space<vmem>>) attributes {dimension_semantics = [#tpu.dimension_semantics<parallel>], iteration_bounds = array<i64: 1>, scalar_prefetch = 0 : i64, scratch_operands = 0 : i64, tpu.core_type = #tpu.core_type<tc>, window_params = [{transform_indices = @transform_0, window_bounds = array<i64: 3, 128>}, {pipeline_mode = #tpu.pipeline_mode<synchronous>, transform_indices = @transform_1, window_bounds = array<i64: 104, 3>}, {pipeline_mode = #tpu.pipeline_mode<synchronous>, transform_indices = @transform_2, window_bounds = array<i64: 104, 1>}, {pipeline_mode = #tpu.pipeline_mode<synchronous>, transform_indices = @transform_3, window_bounds = array<i64: 104, 1>}, {pipeline_mode = #tpu.pipeline_mode<synchronous>, transform_indices = @transform_4, window_bounds = array<i64: 1, 1>}, {transform_indices = @transform_5, window_bounds = array<i64: 1, 128>}]} {
    %c0 = arith.constant 0 : index
    %c0_0 = arith.constant 0 : index
    %0 = vector.load %arg2[%c0, %c0_0] : memref<104x3xf32, #tpu.memory_space<vmem>>, vector<104x3xf32>
    %1 = vector.extract_strided_slice %0 {offsets = [0, 0], sizes = [104, 1], strides = [1, 1]} : vector<104x3xf32> to vector<104x1xf32>
    %2 = vector.extract_strided_slice %0 {offsets = [0, 1], sizes = [104, 1], strides = [1, 1]} : vector<104x3xf32> to vector<104x1xf32>
    %3 = vector.extract_strided_slice %0 {offsets = [0, 2], sizes = [104, 1], strides = [1, 1]} : vector<104x3xf32> to vector<104x1xf32>
    %c0_1 = arith.constant 0 : index
    %c0_2 = arith.constant 0 : index
    %4 = vector.load %arg3[%c0_1, %c0_2] : memref<104x1xf32, #tpu.memory_space<vmem>>, vector<104x1xf32>
    %c0_3 = arith.constant 0 : index
    %c0_4 = arith.constant 0 : index
    %5 = vector.load %arg4[%c0_3, %c0_4] : memref<104x1xf32, #tpu.memory_space<vmem>>, vector<104x1xf32>
    %c0_5 = arith.constant 0 : index
    %c0_6 = arith.constant 0 : index
    %6 = vector.load %arg5[%c0_5, %c0_6] : memref<1x1xf32, #tpu.memory_space<vmem>>, vector<1x1xf32>
    %c0_7 = arith.constant 0 : index
    %c0_8 = arith.constant 0 : index
    %7 = vector.load %arg1[%c0_7, %c0_8] : memref<3x128xf32, #tpu.memory_space<vmem>>, vector<3x128xf32>
    %8 = vector.extract_strided_slice %7 {offsets = [0, 0], sizes = [1, 128], strides = [1, 1]} : vector<3x128xf32> to vector<1x128xf32>
    %9 = vector.broadcast %1 : vector<104x1xf32> to vector<104x128xf32>
    %10 = vector.broadcast %8 : vector<1x128xf32> to vector<104x128xf32>
    %11 = arith.mulf %9, %10 : vector<104x128xf32>
    %12 = vector.broadcast %4 : vector<104x1xf32> to vector<104x128xf32>
    %13 = arith.addf %12, %11 : vector<104x128xf32>
    %14 = vector.extract_strided_slice %7 {offsets = [1, 0], sizes = [1, 128], strides = [1, 1]} : vector<3x128xf32> to vector<1x128xf32>
    %15 = vector.broadcast %2 : vector<104x1xf32> to vector<104x128xf32>
    %16 = vector.broadcast %14 : vector<1x128xf32> to vector<104x128xf32>
    %17 = arith.mulf %15, %16 : vector<104x128xf32>
    %18 = arith.addf %13, %17 : vector<104x128xf32>
    %19 = vector.extract_strided_slice %7 {offsets = [2, 0], sizes = [1, 128], strides = [1, 1]} : vector<3x128xf32> to vector<1x128xf32>
    %20 = vector.broadcast %3 : vector<104x1xf32> to vector<104x128xf32>
    %21 = vector.broadcast %19 : vector<1x128xf32> to vector<104x128xf32>
    %22 = arith.mulf %20, %21 : vector<104x128xf32>
    %23 = arith.addf %18, %22 : vector<104x128xf32>
    %cst = arith.constant 0.000000e+00 : f32
    %24 = vector.broadcast %cst : f32 to vector<104x128xf32>
    %25 = arith.maximumf %23, %24 : vector<104x128xf32>
    %26 = vector.broadcast %5 : vector<104x1xf32> to vector<104x128xf32>
    %27 = arith.mulf %25, %26 : vector<104x128xf32>
    %cst_9 = arith.constant dense<0.000000e+00> : vector<128xf32>
    %28 = vector.multi_reduction <add>, %27, %cst_9 [0] : vector<104x128xf32> to vector<128xf32>
    %29 = vector.shape_cast %28 : vector<128xf32> to vector<1x128xf32>
    %30 = vector.broadcast %6 : vector<1x1xf32> to vector<1x128xf32>
    %31 = arith.addf %29, %30 : vector<1x128xf32>
    %c0_10 = arith.constant 0 : index
    %c0_11 = arith.constant 0 : index
    %32 = vector.load %arg6[%c0_10, %c0_11] : memref<1x128xf32, #tpu.memory_space<vmem>>, vector<1x128xf32>
    tpu.vector_store %arg6[%c0_10, %c0_11], %31 {strides = array<i32>} : memref<1x128xf32, #tpu.memory_space<vmem>>, vector<1x128xf32>,
    return
  }
  func.func @transform_0(%arg0: i32) -> (i32, i32) {
    %c0_i32 = arith.constant 0 : i32
    %c0_i32_0 = arith.constant 0 : i32
    return %c0_i32, %arg0 : i32, i32
  }
  func.func @transform_1(%arg0: i32) -> (i32, i32) {
    %c0_i32 = arith.constant 0 : i32
    %c0_i32_0 = arith.constant 0 : i32
    %c0_i32_1 = arith.constant 0 : i32
    return %c0_i32, %c0_i32_0 : i32, i32
  }
  func.func @transform_2(%arg0: i32) -> (i32, i32) {
    %c0_i32 = arith.constant 0 : i32
    %c0_i32_0 = arith.constant 0 : i32
    %c0_i32_1 = arith.constant 0 : i32
    return %c0_i32, %c0_i32_0 : i32, i32
  }
  func.func @transform_3(%arg0: i32) -> (i32, i32) {
    %c0_i32 = arith.constant 0 : i32
    %c0_i32_0 = arith.constant 0 : i32
    %c0_i32_1 = arith.constant 0 : i32
    return %c0_i32, %c0_i32_0 : i32, i32
  }
  func.func @transform_4(%arg0: i32) -> (i32, i32) {
    %c0_i32 = arith.constant 0 : i32
    %c0_i32_0 = arith.constant 0 : i32
    %c0_i32_1 = arith.constant 0 : i32
    return %c0_i32, %c0_i32_0 : i32, i32
  }
  func.func @transform_5(%arg0: i32) -> (i32, i32) {
    %c0_i32 = arith.constant 0 : i32
    %c0_i32_0 = arith.constant 0 : i32
    return %c0_i32, %arg0 : i32, i32
  }
}

</mosaic_0001>

<bundles_post_ra>
// kernel: tpu_custom_call.1
= control target key start
LH: loop header
LB: loop body
LE: loop exit
PB: predicated region body
PF: predicated region fallthrough
CT: control target
= control target key end

     0   :  { %s913_s0 = inlined_call_operand.vmem [shape: f32[3,128], index: 0, kind: input, shape index: {}]   ;;  %s914_s1 = inlined_call_operand.vmem [shape: f32[104,3], index: 1, kind: input, shape index: {}]   ;;  %s915_s2 = inlined_call_operand.vmem [shape: f32[104,1], index: 2, kind: input, shape index: {}]   ;;  %s916_s3 = inlined_call_operand.vmem [shape: f32[104,1], index: 3, kind: input, shape index: {}]   ;;  %s917_s4 = inlined_call_operand.<no memory space> [shape: f32[1,1], index: 4, kind: input, shape index: {}]   ;;  %s918_s5 = inlined_call_operand.hbm [shape: f32[1,128], index: 5, kind: output, shape index: {}]  }
   0x1   :  { %v10_v0 = vstv %s917_s4 }
   0x2   :  { %11 = vst [vmem:[#allocation2] sm:$0x1] %v10_v0 }
   0x3   :  { %v605_v1 = vld [vmem:[%s914_s1 + $0x10] sm:$0xff]  ;;  %v610_v2 = vld [vmem:[%s914_s1] sm:$0xff]  ;;  %v565_v3 = vmov 1   ;;  %v566_v4 = vmov 0   ;;  %v619_v5 = vld [vmem:[%s914_s1 + $0x18] sm:$0xff] }
   0x4   :  { %527 = vset.pattern.permute.xlu0 %v565_v3  ;;  %526 = vset.pattern.permute.xlu1 %v566_v4  ;;  %v626_v6 = vld [vmem:[%s914_s1 + $0x28] sm:$0xff]  ;;  %v633_v7 = vld [vmem:[%s914_s1 + $0x38] sm:$0xff] }
   0x5   :  { %76 = vperm.xlu1 %526, %v605_v1   ;;  %225 = vperm.xlu0 %527, %v610_v2  }
   0x9   :  { %81 = vperm.xlu1 %526, %v619_v5   ;;  %237 = vperm.xlu0 %527, %v619_v5  }
   0xd   :  { %91 = vperm.xlu1 %526, %v626_v6   ;;  %245 = vperm.xlu0 %527, %v626_v6  }
   0xe   :  { %12 = vsyncpa [#allocation4], 0  ;;  %v32_v8 = vld [vmem:[%s914_s1 + $0x48] sm:$0xff]  ;;  %v643_v9 = vld [vmem:[%s914_s1 + $0x58] sm:$0xff]  ;;  %v567_v12 = vmov 2   ;;  %v129_v48 = vlaneseq }
   0xf   :  { %v36_v10 = vld [vmem:[%s915_s2] sm:$0xff]  ;;  %v24_v11 = vld [vmem:[%s914_s1 + $0x8] sm:$0xff]  ;;  %v38_v13 = vld [vmem:[%s915_s2 + $0x10] sm:$0xff] }
  0x10   :  { %v27_v14 = vld [vmem:[%s914_s1 + $0x20] sm:$0xff]  ;;  %v29_v16 = vld [vmem:[%s914_s1 + $0x30] sm:$0xff]  ;;  %v37_v24 = vld [vmem:[%s915_s2 + $0x8] sm:$0xff]  ;;  %v773_v51 = vshrl.u32 %v129_v48, 7 }
  0x11   :  { %101 = vperm.xlu1 %526, %v633_v7   ;;  %253 = vperm.xlu0 %527, %v633_v7   ;;  %v40_v15 = vld [vmem:[%s915_s2 + $0x20] sm:$0xff]  ;;  %v42_v17 = vld [vmem:[%s915_s2 + $0x30] sm:$0xff]  ;;  %v39_v25 = vld [vmem:[%s915_s2 + $0x18] sm:$0xff] }
  0x12   :  { %v44_v18 = vld [vmem:[%s915_s2 + $0x40] sm:$0xff]  ;;  %v46_v19 = vld [vmem:[%s915_s2 + $0x50] sm:$0xff]  ;;  %v41_v26 = vld [vmem:[%s915_s2 + $0x28] sm:$0xff]  ;;  %v131_v55 = vsub.s32 0, %v773_v51 }
  0x13   :  { %v48_v20 = vld [vmem:[%s915_s2 + $0x60] sm:$0xff]  ;;  %v33_v22 = vld [vmem:[%s914_s1 + $0x50] sm:$0xff]  ;;  %v43_v27 = vld [vmem:[%s915_s2 + $0x38] sm:$0xff] }
  0x14   :  { %v31_v21 = vld [vmem:[%s914_s1 + $0x40] sm:$0xff]  ;;  %v45_v28 = vld [vmem:[%s915_s2 + $0x48] sm:$0xff]  ;;  %v47_v29 = vld [vmem:[%s915_s2 + $0x58] sm:$0xff] }
  0x15   :  { %111 = vperm.xlu1 %526, %v32_v8   ;;  %261 = vperm.xlu0 %527, %v32_v8   ;;  %v691_v23 = vld [vmem:[%s914_s1 + $0x60] sm:$0xff]  ;;  %v50_v31 = vld [vmem:[%s916_s3 + $0x8] sm:$0xff]  ;;  %v51_v33 = vld [vmem:[%s916_s3 + $0x10] sm:$0xff] }
  0x16   :  { %v49_v30 = vld [vmem:[%s916_s3] sm:$0xff]  ;;  %v56_v34 = vld [vmem:[%s916_s3 + $0x38] sm:$0xff]  ;;  %v58_v37 = vld [vmem:[%s916_s3 + $0x48] sm:$0xff] }
  0x17   :  { %v53_v32 = vld [vmem:[%s916_s3 + $0x20] sm:$0xff]  ;;  %v52_v35 = vld [vmem:[%s916_s3 + $0x18] sm:$0xff]  ;;  %v54_v40 = vld [vmem:[%s916_s3 + $0x28] sm:$0xff] }
  0x18   :  { %v57_v36 = vld [vmem:[%s916_s3 + $0x40] sm:$0xff]  ;;  %v60_v38 = vld [vmem:[%s916_s3 + $0x58] sm:$0xff]  ;;  %v55_v41 = vld [vmem:[%s916_s3 + $0x30] sm:$0xff] }
  0x19   :  { %121 = vperm.xlu1 %526, %v643_v9   ;;  %269 = vperm.xlu0 %527, %v643_v9   ;;  %v62_v39 = vld [vmem:[#allocation2] sm:$0x1]  ;;  %v59_v54 = vld [vmem:[%s916_s3 + $0x50] sm:$0xff] }
  0x1a   :  { %v63_v56 = vld [vmem:[%s913_s0] sm:$0x7]  ;;  %s568_s0 = smov [#allocation3]  }
  0x1b   :  { %v61_v59 = vld [vmem:[%s916_s3 + $0x60] sm:$0xff]  ;;  %v797_v60 = vrot.slane %v63_v56, %v131_v55  ;;  %s514_s3 = sshll.u32 %s568_s0, 4  ;;  %s515_s3 = int_to_ptr.vmem [resolvable:$true] %s514_s3 }
  0x1c   :  { %s541_s19 = scalar_lea.vmem %s515_s3, 16  ;;  %s545_s20 = scalar_lea.vmem %s515_s3, 32 }
  0x1d   :  { %148 = vperm.xlu1 %526, %v36_v10   ;;  %530 = vset.pattern.permute.xlu0 %v567_v12  ;;  %p542_p0 = scmp.ne.s32.totalorder %s515_s3, %s541_s19  ;;  %p546_p1 = scmp.lt.s32.totalorder %s515_s3, %s515_s3 }
  0x1e   :  { %311 = vperm.xlu0 %530, %v24_v11   ;;  %p547_p2 = scmp.lt.s32.totalorder %s545_s20, %s541_s19 }
  0x20   :  { %p548_p3 = por %p547_p2, %p546_p1 }
  0x21   :  { %158 = vperm.xlu1 %526, %v38_v13  }
  0x22   :  { %323 = vperm.xlu0 %530, %v27_v14   ;;  %p549_p4 = pnand %p548_p3, %p542_p0 }
  0x25   :  { %168 = vperm.xlu1 %526, %v40_v15  }
  0x26   :  { %331 = vperm.xlu0 %530, %v29_v16  }
  0x29   :  { %178 = vperm.xlu1 %526, %v42_v17  }
  0x2a   :  { %343 = vperm.xlu0 %530, %v32_v8  }
  0x2d   :  { %188 = vperm.xlu1 %526, %v44_v18  }
  0x2e   :  { %536 = vset.pattern.permute.xlu0 %v566_v4 }
  0x2f   :  { %66 = vperm.xlu0 %536, %v610_v2  }
  0x31   :  { %198 = vperm.xlu1 %526, %v46_v19  }
  0x33   :  { %71 = vperm.xlu0 %536, %v24_v11  }
  0x35   :  { %208 = vperm.xlu1 %526, %v48_v20  }
  0x37   :  { %86 = vperm.xlu0 %536, %v27_v14  }
  0x39   :  { %528 = vset.pattern.permute.xlu1 %v565_v3 }
  0x3a   :  { %229 = vperm.xlu1 %528, %v24_v11  }
  0x3b   :  { %96 = vperm.xlu0 %536, %v29_v16  }
  0x3e   :  { %233 = vperm.xlu1 %528, %v605_v1  }
  0x3f   :  { %106 = vperm.xlu0 %536, %v31_v21  }
  0x42   :  { %241 = vperm.xlu1 %528, %v27_v14  }
  0x43   :  { %116 = vperm.xlu0 %536, %v33_v22  }
  0x46   :  { %249 = vperm.xlu1 %528, %v29_v16  }
  0x47   :  { %126 = vperm.xlu0 %536, %v691_v23  }
  0x4a   :  { %257 = vperm.xlu1 %528, %v31_v21  }
  0x4b   :  { %153 = vperm.xlu0 %536, %v37_v24  }
  0x4e   :  { %265 = vperm.xlu1 %528, %v33_v22  }
  0x4f   :  { %163 = vperm.xlu0 %536, %v39_v25  }
  0x52   :  { %529 = vset.pattern.permute.xlu1 %v567_v12 }
  0x53   :  { %307 = vperm.xlu1 %529, %v610_v2   ;;  %173 = vperm.xlu0 %536, %v41_v26  }
  0x57   :  { %315 = vperm.xlu1 %529, %v605_v1   ;;  %183 = vperm.xlu0 %536, %v43_v27  }
  0x5b   :  { %319 = vperm.xlu1 %529, %v619_v5   ;;  %193 = vperm.xlu0 %536, %v45_v28  }
  0x5f   :  { %531 = vset.pattern.permute.xlu1 %v566_v4  ;;  %203 = vperm.xlu0 %536, %v47_v29  }
  0x60   :  { %403 = vperm.xlu1 %531, %v49_v30  }
  0x63   :  { %408 = vperm.xlu0 %536, %v50_v31  }
  0x64   :  { %532 = vset.pattern.permute.xlu1 %v567_v12 }
  0x65   :  { %327 = vperm.xlu1 %532, %v626_v6   ;;  %v278_v6 = vsub.s32 1, %v773_v51 }
  0x67   :  { %423 = vperm.xlu0 %536, %v53_v32  }
  0x69   :  { %533 = vset.pattern.permute.xlu1 %v566_v4 }
  0x6a   :  { %413 = vperm.xlu1 %533, %v51_v33  }
  0x6b   :  { %438 = vperm.xlu0 %536, %v56_v34  }
  0x6e   :  { %418 = vperm.xlu1 %533, %v52_v35  }
  0x6f   :  { %443 = vperm.xlu0 %536, %v57_v36  }
  0x72   :  { %534 = vset.pattern.permute.xlu1 %v567_v12 }
  0x73   :  { %335 = vperm.xlu1 %534, %v633_v7   ;;  %448 = vperm.xlu0 %536, %v58_v37  }
  0x77   :  { %339 = vperm.xlu1 %534, %v31_v21   ;;  %458 = vperm.xlu0 %536, %v60_v38   ;;  %v360_v21 = vsub.s32 2, %v773_v51 }
  0x79   :  { %v823_v25 = vrot.slane %v63_v56, %v360_v21 }
  0x7b   :  { %535 = vset.pattern.permute.xlu1 %v566_v4  ;;  %499 = vperm.xlu0 %536, %v62_v39  }
  0x7c   :  { %428 = vperm.xlu1 %535, %v54_v40  }
  0x80   :  { %433 = vperm.xlu1 %535, %v55_v41  }
  0x84   :  { %v77_v42 = vpop.permute.xlu1 %76  ;;  %537 = vset.pattern.permute.xlu1 %v567_v12  ;;  %v226_v43 = vpop.permute.xlu0 %225 }
  0x85   :  { %347 = vperm.xlu1 %537, %v33_v22   ;;  %v135_v63 = vmul.f32 %v797_v60, %v77_v42 }
  0x88   :  { %v757_v44 = vpop.permute.xlu1 %81  ;;  %v759_v45 = vpop.permute.xlu0 %237 }
  0x89   :  { %538 = vset.pattern.permute.xlu1 %v565_v3 }
  0x8a   :  { %273 = vperm.xlu1 %538, %v691_v23  }
  0x8c   :  { %v763_v46 = vpop.permute.xlu1 %91  ;;  %v765_v47 = vpop.permute.xlu0 %245 }
  0x8e   :  { %539 = vset.pattern.permute.xlu1 %v567_v12 }
  0x8f   :  { %351 = vperm.xlu1 %539, %v643_v9   ;;  %v809_v9 = vrot.slane %v63_v56, %v278_v6 }
  0x90   :  { %v769_v49 = vpop.permute.xlu1 %101  ;;  %v771_v50 = vpop.permute.xlu0 %253 }
  0x91   :  { %v280_v13 = vmul.f32 %v809_v9, %v226_v43  ;;  %v136_v43 = vmul.f32 %v797_v60, %v757_v44  ;;  %v283_v56 = vmul.f32 %v809_v9, %v759_v45  ;;  %v140_v44 = vmul.f32 %v797_v60, %v769_v49 }
  0x92   :  { %v287_v45 = vmul.f32 %v809_v9, %v771_v50 }
  0x93   :  { %355 = vperm.xlu1 %539, %v691_v23  }
  0x94   :  { %v776_v52 = vpop.permute.xlu1 %111  ;;  %v778_v53 = vpop.permute.xlu0 %261 }
  0x97   :  { %540 = vset.pattern.permute.xlu1 %v566_v4 }
  0x98   :  { %v788_v57 = vpop.permute.xlu1 %121  ;;  %453 = vperm.xlu1 %540, %v59_v54   ;;  %v790_v58 = vpop.permute.xlu0 %269 }
  0x9c   :  { %v149_v61 = vpop.permute.xlu1 %148  ;;  %463 = vperm.xlu1 %540, %v61_v59  }
  0x9d   :  { %v799_v62 = vpop.permute.xlu0 %311 }
  0xa0   :  { %v159_v0 = vpop.permute.xlu1 %158 }
  0xa1   :  { %v802_v1 = vadd.f32 %v159_v0, %v135_v63  ;;  %v324_v2 = vpop.permute.xlu0 %323 }
  0xa2   :  { %v366_v31 = vmul.f32 %v823_v25, %v324_v2 }
  0xa4   :  { %v169_v3 = vpop.permute.xlu1 %168 }
  0xa5   :  { %v332_v4 = vpop.permute.xlu0 %331 }
  0xa6   :  { %v368_v38 = vmul.f32 %v823_v25, %v332_v4 }
  0xa8   :  { %v179_v5 = vpop.permute.xlu1 %178 }
  0xa9   :  { %v805_v7 = vpop.permute.xlu0 %343 }
  0xaa   :  { %v371_v50 = vmul.f32 %v823_v25, %v805_v7 }
  0xac   :  { %v807_v8 = vpop.permute.xlu1 %188 }
  0xae   :  { %v67_v10 = vpop.permute.xlu0 %66 }
  0xaf   :  { %v133_v11 = vmul.f32 %v797_v60, %v67_v10 }
  0xb0   :  { %v812_v12 = vpop.permute.xlu1 %198 }
  0xb1   :  { %v211_v14 = vadd.f32 %v149_v61, %v133_v11  ;;  %v138_v61 = vmul.f32 %v797_v60, %v763_v46 }
  0xb2   :  { %v72_v15 = vpop.permute.xlu0 %71 }
  0xb3   :  { %v815_v16 = vadd.f32 %v280_v13, %v211_v14  ;;  %v142_v14 = vmul.f32 %v797_v60, %v776_v52  ;;  %v363_v52 = vmul.f32 %v823_v25, %v799_v62 }
  0xb4   :  { %v817_v17 = vpop.permute.xlu1 %208 }
  0xb6   :  { %v87_v18 = vpop.permute.xlu0 %86 }
  0xb7   :  { %v137_v23 = vmul.f32 %v797_v60, %v87_v18 }
  0xb9   :  { %v230_v19 = vpop.permute.xlu1 %229  ;;  %v215_v27 = vadd.f32 %v169_v3, %v137_v23  ;;  %v285_v3 = vmul.f32 %v809_v9, %v765_v47 }
  0xba   :  { %v97_v20 = vpop.permute.xlu0 %96  ;;  %v281_v47 = vmul.f32 %v809_v9, %v230_v19 }
  0xbb   :  { %v139_v28 = vmul.f32 %v797_v60, %v97_v20 }
  0xbd   :  { %v234_v22 = vpop.permute.xlu1 %233  ;;  %v217_v34 = vadd.f32 %v179_v5, %v139_v28  ;;  %v134_v5 = vmul.f32 %v797_v60, %v72_v15  ;;  %v289_v15 = vmul.f32 %v809_v9, %v778_v53  ;;  %v291_v53 = vmul.f32 %v809_v9, %v790_v58 }
  0xbe   :  { %v821_v24 = vpop.permute.xlu0 %106  ;;  %v282_v28 = vmul.f32 %v809_v9, %v234_v22 }
  0xc0   :  { %v295_v7 = vadd.f32 %v282_v28, %v802_v1 }
  0xc1   :  { %v242_v26 = vpop.permute.xlu1 %241 }
  0xc2   :  { %v284_v29 = vmul.f32 %v809_v9, %v242_v26  ;;  %v827_v30 = vpop.permute.xlu0 %116  ;;  %v144_v26 = vmul.f32 %v797_v60, %v788_v57 }
  0xc4   :  { %v297_v32 = vadd.f32 %v284_v29, %v215_v27 }
  0xc5   :  { %v250_v33 = vpop.permute.xlu1 %249 }
  0xc6   :  { %v286_v35 = vmul.f32 %v809_v9, %v250_v33  ;;  %v831_v36 = vpop.permute.xlu0 %126  ;;  %v833_v37 = vadd.f32 %v366_v31, %v297_v32 }
  0xc8   :  { %v299_v39 = vadd.f32 %v286_v35, %v217_v34 }
  0xc9   :  { %v836_v40 = vpop.permute.xlu1 %257 }
  0xca   :  { %v154_v41 = vpop.permute.xlu0 %153  ;;  %v838_v42 = vadd.f32 %v368_v38, %v299_v39 }
  0xcb   :  { %v212_v46 = vadd.f32 %v154_v41, %v134_v5 }
  0xcd   :  { %v842_v48 = vpop.permute.xlu1 %265  ;;  %v294_v23 = vadd.f32 %v281_v47, %v212_v46  ;;  %v288_v47 = vmul.f32 %v809_v9, %v836_v40  ;;  %v394_v40 = vmax.f32 %v838_v42, 0.0 }
  0xce   :  { %v164_v54 = vpop.permute.xlu0 %163  ;;  %v290_v42 = vmul.f32 %v809_v9, %v842_v48 }
  0xcf   :  { %v214_v59 = vadd.f32 %v164_v54, %v136_v43  ;;  %v376_v34 = vadd.f32 %v363_v52, %v294_v23 }
  0xd1   :  { %v296_v63 = vadd.f32 %v283_v56, %v214_v59  ;;  %v389_v41 = vmax.f32 %v376_v34, 0.0 }
  0xd2   :  { %v308_v0 = vpop.permute.xlu1 %307  ;;  %v174_v2 = vpop.permute.xlu0 %173 }
  0xd3   :  { %v216_v4 = vadd.f32 %v174_v2, %v138_v61  ;;  %v362_v19 = vmul.f32 %v823_v25, %v308_v0 }
  0xd5   :  { %v298_v6 = vadd.f32 %v285_v3, %v216_v4  ;;  %v375_v62 = vadd.f32 %v362_v19, %v815_v16  ;;  %v392_v16 = vmax.f32 %v833_v37, 0.0 }
  0xd6   :  { %v316_v10 = vpop.permute.xlu1 %315  ;;  %v184_v11 = vpop.permute.xlu0 %183 }
  0xd7   :  { %v218_v13 = vadd.f32 %v184_v11, %v140_v44  ;;  %v364_v57 = vmul.f32 %v823_v25, %v316_v10  ;;  %v388_v54 = vmax.f32 %v375_v62, 0.0 }
  0xd9   :  { %v300_v18 = vadd.f32 %v287_v45, %v218_v13  ;;  %v377_v22 = vadd.f32 %v364_v57, %v295_v7 }
  0xda   :  { %v320_v20 = vpop.permute.xlu1 %319  ;;  %v194_v21 = vpop.permute.xlu0 %193 }
  0xdb   :  { %v220_v49 = vadd.f32 %v194_v21, %v142_v14  ;;  %v365_v39 = vmul.f32 %v823_v25, %v320_v20  ;;  %v390_v61 = vmax.f32 %v377_v22, 0.0 }
  0xdd   :  { %v302_v27 = vadd.f32 %v289_v15, %v220_v49  ;;  %v378_v56 = vadd.f32 %v365_v39, %v296_v63  ;;  %v141_v63 = vmul.f32 %v797_v60, %v821_v24 }
  0xde   :  { %v204_v29 = vpop.permute.xlu0 %203 }
  0xdf   :  { %v222_v31 = vadd.f32 %v204_v29, %v144_v26  ;;  %v404_v32 = vpop.permute.xlu1 %403  ;;  %v384_v33 = vadd.f32 %v371_v50, %v302_v27  ;;  %v391_v5 = vmax.f32 %v378_v56, 0.0  ;;  %v219_v37 = vadd.f32 %v807_v8, %v141_v63 }
  0xe0   :  { %v466_v59 = vmul.f32 %v404_v32, %v388_v54  ;;  %v143_v54 = vmul.f32 %v797_v60, %v827_v30  ;;  %v145_v56 = vmul.f32 %v797_v60, %v831_v36 }
  0xe1   :  { %v871_v35 = vadd.f32 %v291_v53, %v222_v31  ;;  %v301_v26 = vadd.f32 %v288_v47, %v219_v37  ;;  %v397_v8 = vmax.f32 %v384_v33, 0.0 }
  0xe2   :  { %v409_v38 = vpop.permute.xlu0 %408 }
  0xe3   :  { %v467_v58 = vmul.f32 %v409_v38, %v389_v41 }
  0xe4   :  { %v328_v43 = vpop.permute.xlu1 %327 }
  0xe5   :  { %v479_v2 = vadd.f32 %v467_v58, %v466_v59  ;;  %v367_v13 = vmul.f32 %v823_v25, %v328_v43  ;;  %v221_v58 = vadd.f32 %v812_v12, %v143_v54 }
  0xe6   :  { %v424_v44 = vpop.permute.xlu0 %423 }
  0xe7   :  { %v470_v11 = vmul.f32 %v424_v44, %v392_v16  ;;  %v380_v20 = vadd.f32 %v367_v13, %v298_v6 }
  0xe9   :  { %v414_v0 = vpop.permute.xlu1 %413  ;;  %v393_v27 = vmax.f32 %v380_v20, 0.0 }
  0xea   :  { %v468_v3 = vmul.f32 %v414_v0, %v390_v61  ;;  %v439_v49 = vpop.permute.xlu0 %438  ;;  %v303_v0 = vadd.f32 %v290_v42, %v221_v58 }
  0xec   :  { %v480_v4 = vadd.f32 %v479_v2, %v468_v3  ;;  %v223_v3 = vadd.f32 %v817_v17, %v145_v56 }
  0xed   :  { %v419_v1 = vpop.permute.xlu1 %418 }
  0xee   :  { %v469_v10 = vmul.f32 %v419_v1, %v391_v5  ;;  %v444_v29 = vpop.permute.xlu0 %443 }
  0xf0   :  { %v481_v45 = vadd.f32 %v480_v4, %v469_v10 }
  0xf2   :  { %v336_v46 = vpop.permute.xlu1 %335  ;;  %v482_v14 = vadd.f32 %v481_v45, %v470_v11  ;;  %v449_v7 = vpop.permute.xlu0 %448 }
  0xf3   :  { %v369_v21 = vmul.f32 %v823_v25, %v336_v46 }
  0xf5   :  { %v382_v50 = vadd.f32 %v369_v21, %v300_v18  ;;  %v475_v18 = vmul.f32 %v449_v7, %v397_v8 }
  0xf6   :  { %v340_v15 = vpop.permute.xlu1 %339  ;;  %v459_v10 = vpop.permute.xlu0 %458 }
  0xf7   :  { %v370_v23 = vmul.f32 %v823_v25, %v340_v15  ;;  %v395_v24 = vmax.f32 %v382_v50, 0.0 }
  0xf9   :  { %v383_v28 = vadd.f32 %v370_v23, %v301_v26  ;;  %v473_v57 = vmul.f32 %v439_v49, %v395_v24 }
  0xfa   :  { %v500_v21 = vpop.permute.xlu0 %499 }
  0xfb   :  { %v429_v52 = vpop.permute.xlu1 %428  ;;  %v396_v31 = vmax.f32 %v383_v28, 0.0  ;;  %v505_v15 = vrot.slane %v500_v21, %v131_v55 }
  0xfc   :  { %v471_v19 = vmul.f32 %v429_v52, %v393_v27 }
  0xfd   :  { %v474_v62 = vmul.f32 %v444_v29, %v396_v31 }
  0xfe   :  { %v483_v53 = vadd.f32 %v482_v14, %v471_v19 }
  0xff   :  { %v434_v6 = vpop.permute.xlu1 %433 }
 0x100   :  { %v472_v32 = vmul.f32 %v434_v6, %v394_v40 }
 0x102   :  { %v484_v34 = vadd.f32 %v483_v53, %v472_v32 }
 0x104   :  { %v485_v38 = vadd.f32 %v484_v34, %v473_v57  ;;  %v348_v22 = vpop.permute.xlu1 %347 }
 0x105   :  { %v372_v33 = vmul.f32 %v823_v25, %v348_v22 }
 0x106   :  { %v486_v39 = vadd.f32 %v485_v38, %v474_v62 }
 0x107   :  { %v385_v4 = vadd.f32 %v372_v33, %v303_v0 }
 0x108   :  { %v487_v41 = vadd.f32 %v486_v39, %v475_v18 }
 0x109   :  { %v274_v43 = vpop.permute.xlu1 %273  ;;  %v398_v60 = vmax.f32 %v385_v4, 0.0 }
 0x10a   :  { %v292_v2 = vmul.f32 %v809_v9, %v274_v43 }
 0x10c   :  { %v305_v12 = vadd.f32 %v292_v2, %v223_v3 }
 0x10e   :  { %v352_v59 = vpop.permute.xlu1 %351 }
 0x10f   :  { %v373_v61 = vmul.f32 %v823_v25, %v352_v59 }
 0x111   :  { %v386_v30 = vadd.f32 %v373_v61, %v871_v35 }
 0x112   :  { %v356_v5 = vpop.permute.xlu1 %355 }
 0x113   :  { %v374_v48 = vmul.f32 %v823_v25, %v356_v5  ;;  %v399_v44 = vmax.f32 %v386_v30, 0.0 }
 0x115   :  { %v387_v1 = vadd.f32 %v374_v48, %v305_v12  ;;  %v477_v11 = vmul.f32 %v459_v10, %v399_v44 }
 0x117   :  { %v454_v36 = vpop.permute.xlu1 %453  ;;  %v400_v13 = vmax.f32 %v387_v1, 0.0 }
 0x118   :  { %v476_v16 = vmul.f32 %v454_v36, %v398_v60 }
 0x11a   :  { %v488_v45 = vadd.f32 %v487_v41, %v476_v16 }
 0x11b   :  { %v464_v46 = vpop.permute.xlu1 %463 }
 0x11c   :  { %v478_v9 = vmul.f32 %v464_v46, %v400_v13  ;;  %v489_v14 = vadd.f32 %v488_v45, %v477_v11 }
 0x11e   :  { %v490_v17 = vadd.f32 %v489_v14, %v478_v9 }
 0x120   :  { %v491_v63 = vrot.slane %v490_v17, 4 }
 0x122   :  { %v492_v47 = vadd.f32 %v491_v63, %v490_v17 }
 0x124   :  { %v493_v35 = vrot.slane %v492_v47, 2 }
 0x126   :  { %v494_v20 = vadd.f32 %v493_v35, %v492_v47 }
 0x128   :  { %v495_v25 = vrot.slane %v494_v20, 1 }
 0x12a   :  { %v496_v49 = vadd.f32 %v495_v25, %v494_v20 }
 0x12c   :  { %v506_v37 = vadd.f32 %v505_v15, %v496_v49 }
 0x12e   :  { %507 = vst [vmem:[#allocation3] sm:$0x1] %v506_v37 }
 0x12f   :  { %552 = shalt.err (!%p549_p4)
}
 0x130   :  { %s553_s23 = scalar_lea.hbm %s918_s5, 16 }
 0x131   :  { %p554_p5 = scmp.ne.s32.totalorder %s918_s5, %s553_s23  ;;  %p557_p6 = scmp.lt.u32.totalorder %s553_s23, %s918_s5 }
 0x133   :  { %p559_p7 = pnand %p557_p6, %p554_p5 }
 0x135   :  { %562 = shalt.err (!%p559_p7)
}
 0x136   :  { %517 = dma.vmem_to_hbm [thread:$0]  %s515_s3, 16, %s918_s5, [#allocation4]  }
 0x137   :  { %563 = dma.done.wait [#allocation4], 16  }
 0x138   :  { %564 = vsyncadd [#allocation4], 4294967280 }
 0x139   :  { %521 = vsyncpa [#allocation4], 1 }

</bundles_post_ra>
